<compile_context>
chip_gen: v7x
topology: tpu7x:2x2x1
jax: 0.10.0
libtpu: 0.0.40
codegen_flags: <defaults>
</compile_context>

<pallas_src>
import jax
import jax.numpy as jnp
from jax.experimental import pallas as pl
from jax.experimental.pallas import tpu as pltpu


# ----------------------------------------------------------------------------
# Kernel
# ----------------------------------------------------------------------------
def _lstmc_seq_kernel(x_ref, c0_ref, h0_ref, wx_ref, wh_ref, wc_ref, wc4_ref,
                      b_ref, out_ref, c_scr, h_scr):
    """One timestep of the fused LSTMC recurrence.

    x_ref:   [B, D]        current timestep input (time axis squeezed)
    c0_ref:  [B, H]        initial cell state   (read only at t == 0)
    h0_ref:  [B, H]        initial hidden state (read only at t == 0)
    wx_ref:  [D, 4H]       stacked, transposed w1..w4
    wh_ref:  [H, 4H]       stacked, transposed r1..r4
    wc_ref:  [H, 4H]       stacked, transposed c1..c3, zero pad for gate 4
    wc4_ref: [H, H]        transposed c4 (applied to the UPDATED cell)
    b_ref:   [1, 4H]       fused biases (gate4 slot = bw4 + br4 + bc4), f32
    out_ref: [B, 4H]       [o | c_new | h_new | pad] for this timestep
    c_scr, h_scr: [B, H]   f32 VMEM carry, persists across grid steps
    """
    H = c0_ref.shape[1]
    t = pl.program_id(0)

    @pl.when(t == 0)
    def _():
        c_scr[...] = c0_ref[...].astype(jnp.float32)
        h_scr[...] = h0_ref[...].astype(jnp.float32)

    c_old = c_scr[...]
    h_old = h_scr[...]

    wdt = wx_ref.dtype                      # matmul operand dtype (f32 or bf16)
    x = x_ref[...].astype(wdt)

    # Fused pre-activation for all four gates: [B, 4H], f32 accumulation.
    pre = (jnp.dot(x, wx_ref[...], preferred_element_type=jnp.float32)
           + jnp.dot(h_old.astype(wdt), wh_ref[...],
                     preferred_element_type=jnp.float32)
           + jnp.dot(c_old.astype(wdt), wc_ref[...],
                     preferred_element_type=jnp.float32)
           + b_ref[...])

    # Gate math stays in float32 (v5e has no bf16 VPU/EUP path).
    i = jax.nn.sigmoid(pre[:, 0 * H:1 * H])
    f = jax.nn.sigmoid(pre[:, 1 * H:2 * H])
    k = jnp.tanh(pre[:, 2 * H:3 * H])

    c_new = f * c_old + i * jnp.maximum(k, 0.0)          # relu(k)

    # Gate 4 uses the *updated* cell state for its c-term.
    o_pre = pre[:, 3 * H:4 * H] + jnp.dot(
        c_new.astype(wdt), wc4_ref[...], preferred_element_type=jnp.float32)
    o = jax.nn.sigmoid(o_pre)
    h_new = o * jnp.maximum(c_new, 0.0)                  # relu(c_new)

    # Update the VMEM carry.
    c_scr[...] = c_new
    h_scr[...] = h_new

    # Lane-dense [B, 4H] output slab (one DMA per step instead of three).
    out_ref[:, 0 * H:1 * H] = o.astype(out_ref.dtype)
    out_ref[:, 1 * H:2 * H] = c_new.astype(out_ref.dtype)
    out_ref[:, 2 * H:3 * H] = h_new.astype(out_ref.dtype)
    out_ref[:, 3 * H:4 * H] = jnp.zeros_like(o).astype(out_ref.dtype)


# ----------------------------------------------------------------------------
# Parameter packing (done once, outside the hot path)
# ----------------------------------------------------------------------------
def pack_params(raw, weight_dtype=jnp.float32):
    """Pack the 12 PyTorch-layout Linear weights into MXU-friendly slabs.

    raw["wG"]: [H, D], raw["rG"]: [H, H], raw["cG"]: [H, H] for G in 1..4,
    raw["bwG"]: [H] (w biases), raw["br4"], raw["bc4"]: [H].
    weight_dtype: jnp.bfloat16 recommended on v6e/v7x, f32 on v5e / for tests.
    """
    H = raw["w1"].shape[0]
    wx = jnp.concatenate(
        [raw["w1"].T, raw["w2"].T, raw["w3"].T, raw["w4"].T], axis=1)   # [D,4H]
    wh = jnp.concatenate(
        [raw["r1"].T, raw["r2"].T, raw["r3"].T, raw["r4"].T], axis=1)   # [H,4H]
    wc = jnp.concatenate(
        [raw["c1"].T, raw["c2"].T, raw["c3"].T,
         jnp.zeros((H, H), raw["c1"].dtype)], axis=1)                   # [H,4H]
    wc4 = raw["c4"].T                                                   # [H,H]
    b = jnp.concatenate(
        [raw["bw1"], raw["bw2"], raw["bw3"],
         raw["bw4"] + raw["br4"] + raw["bc4"]]).reshape(1, 4 * H)       # [1,4H]
    return {
        "wx": wx.astype(weight_dtype),
        "wh": wh.astype(weight_dtype),
        "wc": wc.astype(weight_dtype),
        "wc4": wc4.astype(weight_dtype),
        "b": b.astype(jnp.float32),          # bias added post-accumulation, f32
    }


# ----------------------------------------------------------------------------
# Wrappers
# ----------------------------------------------------------------------------
@jax.jit
def lstmc_sequence(x_seq, c0, h0, params):
    """Run T fused LSTMC steps in a single pallas_call.

    x_seq: [T, B, D], c0/h0: [B, H] -> (o_seq, c_seq, h_seq) each [T, B, H].
    """
    T, B, D = x_seq.shape
    H = c0.shape[1]

    out = pl.pallas_call(
        _lstmc_seq_kernel,
        out_shape=jax.ShapeDtypeStruct((T, B, 4 * H), jnp.float32),
        grid=(T,),
        in_specs=[
            pl.BlockSpec((None, B, D), lambda t: (t, 0, 0)),   # x_t (squeezed)
            pl.BlockSpec((B, H), lambda t: (0, 0)),            # c0 (resident)
            pl.BlockSpec((B, H), lambda t: (0, 0)),            # h0 (resident)
            pl.BlockSpec((D, 4 * H), lambda t: (0, 0)),        # Wx (resident)
            pl.BlockSpec((H, 4 * H), lambda t: (0, 0)),        # Wh (resident)
            pl.BlockSpec((H, 4 * H), lambda t: (0, 0)),        # Wc (resident)
            pl.BlockSpec((H, H), lambda t: (0, 0)),            # Wc4 (resident)
            pl.BlockSpec((1, 4 * H), lambda t: (0, 0)),        # bias (resident)
        ],
        out_specs=pl.BlockSpec((None, B, 4 * H), lambda t: (t, 0, 0)),
        scratch_shapes=[
            pltpu.VMEM((B, H), jnp.float32),   # c carry
            pltpu.VMEM((B, H), jnp.float32),   # h carry
        ],
        compiler_params=pltpu.CompilerParams(
            dimension_semantics=("arbitrary",)),   # recurrence => sequential
    )(x_seq, c0, h0, params["wx"], params["wh"], params["wc"],
      params["wc4"], params["b"])

    o_seq = out[:, :, 0:H]
    c_seq = out[:, :, H:2 * H]
    h_seq = out[:, :, 2 * H:3 * H]
    return o_seq, c_seq, h_seq


def lstmc_cell(x, c, h, params):
    """Single step, matching LSTMCcell.forward(x, c, h) -> (o, c_new, h_new)."""
    o_seq, c_seq, h_seq = lstmc_sequence(x[None], c, h, params)
    return o_seq[0], c_seq[0], h_seq[0]


# ----------------------------------------------------------------------------
# Pure-JAX reference (mirrors the PyTorch module exactly)
# ----------------------------------------------------------------------------
def reference_step(x, c, h, raw):
    def lin(v, w, b=None):
        out = v @ w.T
        return out + b if b is not None else out

    i = jax.nn.sigmoid(lin(x, raw["w1"], raw["bw1"])
                       + lin(h, raw["r1"]) + lin(c, raw["c1"]))
    f = jax.nn.sigmoid(lin(x, raw["w2"], raw["bw2"])
                       + lin(h, raw["r2"]) + lin(c, raw["c2"]))
    k = jnp.tanh(lin(x, raw["w3"], raw["bw3"])
                 + lin(h, raw["r3"]) + lin(c, raw["c3"]))
    c_new = f * c + i * jax.nn.relu(k)
    o = jax.nn.sigmoid(lin(x, raw["w4"], raw["bw4"])
                       + lin(h, raw["r4"], raw["br4"])
                       + lin(c_new, raw["c4"], raw["bc4"]))
    h_new = o * jax.nn.relu(c_new)
    return o, c_new, h_new


def reference_sequence(x_seq, c0, h0, raw):
    def step(carry, x):
        c, h = carry
        o, c_new, h_new = reference_step(x, c, h, raw)
        return (c_new, h_new), (o, c_new, h_new)

    _, (o_seq, c_seq, h_seq) = jax.lax.scan(step, (c0, h0), x_seq)
    return o_seq, c_seq, h_seq


# ----------------------------------------------------------------------------
# Demo / self-test
# ----------------------------------------------------------------------------
if __name__ == "__main__":
    input_dim = 3      # module default input_length
    hidden_dim = 32
    batch = 8
    seq_len = 16

    key = jax.random.PRNGKey(0)
    k_inputs, k_params = jax.random.split(key)

    # Inputs.
    kx, kc, kh = jax.random.split(k_inputs, 3)
    x_seq = jax.random.normal(kx, (seq_len, batch, input_dim), dtype=jnp.float32)
    c0 = jax.random.normal(kc, (batch, hidden_dim), dtype=jnp.float32)
    h0 = jax.random.normal(kh, (batch, hidden_dim), dtype=jnp.float32)

    # Deterministic synthetic parameters (nn.Linear-style uniform init).
    def uniform(k, shape, fan_in):
        bound = 1.0 / (fan_in ** 0.5)
        return jax.random.uniform(k, shape, dtype=jnp.float32,
                                  minval=-bound, maxval=bound)

    pkeys = iter(jax.random.split(k_params, 32))
    raw = {}
    for g in (1, 2, 3, 4):
        raw[f"w{g}"] = uniform(next(pkeys), (hidden_dim, input_dim), input_dim)
        raw[f"bw{g}"] = uniform(next(pkeys), (hidden_dim,), input_dim)
        raw[f"r{g}"] = uniform(next(pkeys), (hidden_dim, hidden_dim), hidden_dim)
        raw[f"c{g}"] = uniform(next(pkeys), (hidden_dim, hidden_dim), hidden_dim)
    raw["br4"] = uniform(next(pkeys), (hidden_dim,), hidden_dim)
    raw["bc4"] = uniform(next(pkeys), (hidden_dim,), hidden_dim)

    # Pack once (weights pre-transposed / pre-stacked; use bf16 on v6e/v7x).
    params = pack_params(raw, weight_dtype=jnp.float32)

    # Fused multi-step run.
    o_seq, c_seq, h_seq = lstmc_sequence(x_seq, c0, h0, params)
    jax.block_until_ready((o_seq, c_seq, h_seq))

    o_ref, c_ref, h_ref = reference_sequence(x_seq, c0, h0, raw)
    assert jnp.allclose(o_seq, o_ref, atol=1e-4, rtol=1e-4)
    assert jnp.allclose(c_seq, c_ref, atol=1e-4, rtol=1e-4)
    assert jnp.allclose(h_seq, h_ref, atol=1e-4, rtol=1e-4)

    # Single-step path (module forward semantics).
    o1, c1, h1 = lstmc_cell(x_seq[0], c0, h0, params)
    jax.block_until_ready((o1, c1, h1))
    o1_ref, c1_ref, h1_ref = reference_step(x_seq[0], c0, h0, raw)
    assert jnp.allclose(o1, o1_ref, atol=1e-5, rtol=1e-5)
    assert jnp.allclose(c1, c1_ref, atol=1e-5, rtol=1e-5)
    assert jnp.allclose(h1, h1_ref, atol=1e-5, rtol=1e-5)

    print("KERNEL_OK")
</pallas_src>

<mosaic_0001>
module attributes {stable_mosaic.version = 11 : i64} {
  func.func @_lstmc_seq_kernel(%arg0: i32, %arg1: memref<1x8x3xf32, #tpu.memory_space<vmem>>, %arg2: memref<8x32xf32, #tpu.memory_space<vmem>>, %arg3: memref<8x32xf32, #tpu.memory_space<vmem>>, %arg4: memref<3x128xf32, #tpu.memory_space<vmem>>, %arg5: memref<32x128xf32, #tpu.memory_space<vmem>>, %arg6: memref<32x128xf32, #tpu.memory_space<vmem>>, %arg7: memref<32x32xf32, #tpu.memory_space<vmem>>, %arg8: memref<1x128xf32, #tpu.memory_space<vmem>>, %arg9: memref<1x8x128xf32, #tpu.memory_space<vmem>>, %arg10: memref<8x32xf32, #tpu.memory_space<vmem>>, %arg11: memref<8x32xf32, #tpu.memory_space<vmem>>) attributes {dimension_semantics = [#tpu.dimension_semantics<arbitrary>], iteration_bounds = array<i64: 16>, scalar_prefetch = 0 : i64, scratch_operands = 2 : i64, tpu.core_type = #tpu.core_type<tc>, window_params = [{transform_indices = @transform_0, window_bounds = array<i64: 1, 8, 3>}, {pipeline_mode = #tpu.pipeline_mode<synchronous>, transform_indices = @transform_1, window_bounds = array<i64: 8, 32>}, {pipeline_mode = #tpu.pipeline_mode<synchronous>, transform_indices = @transform_2, window_bounds = array<i64: 8, 32>}, {pipeline_mode = #tpu.pipeline_mode<synchronous>, transform_indices = @transform_3, window_bounds = array<i64: 3, 128>}, {pipeline_mode = #tpu.pipeline_mode<synchronous>, transform_indices = @transform_4, window_bounds = array<i64: 32, 128>}, {pipeline_mode = #tpu.pipeline_mode<synchronous>, transform_indices = @transform_5, window_bounds = array<i64: 32, 128>}, {pipeline_mode = #tpu.pipeline_mode<synchronous>, transform_indices = @transform_6, window_bounds = array<i64: 32, 32>}, {pipeline_mode = #tpu.pipeline_mode<synchronous>, transform_indices = @transform_7, window_bounds = array<i64: 1, 128>}, {transform_indices = @transform_8, window_bounds = array<i64: 1, 8, 128>}]} {
    %c0_i32 = arith.constant 0 : i32
    %0 = arith.cmpi eq, %arg0, %c0_i32 : i32
    %1 = arith.extui %0 : i1 to i32
    %c0_i32_0 = arith.constant 0 : i32
    %2 = arith.cmpi ne, %1, %c0_i32_0 : i32
    scf.if %2 {
      %c0_39 = arith.constant 0 : index
      %c0_40 = arith.constant 0 : index
      %64 = vector.load %arg2[%c0_39, %c0_40] : memref<8x32xf32, #tpu.memory_space<vmem>>, vector<8x32xf32>
      %c0_41 = arith.constant 0 : index
      %c0_42 = arith.constant 0 : index
      %65 = vector.load %arg10[%c0_41, %c0_42] : memref<8x32xf32, #tpu.memory_space<vmem>>, vector<8x32xf32>
      tpu.vector_store %arg10[%c0_41, %c0_42], %64 {strides = array<i32>} : memref<8x32xf32, #tpu.memory_space<vmem>>, vector<8x32xf32>,
      %c0_43 = arith.constant 0 : index
      %c0_44 = arith.constant 0 : index
      %66 = vector.load %arg3[%c0_43, %c0_44] : memref<8x32xf32, #tpu.memory_space<vmem>>, vector<8x32xf32>
      %c0_45 = arith.constant 0 : index
      %c0_46 = arith.constant 0 : index
      %67 = vector.load %arg11[%c0_45, %c0_46] : memref<8x32xf32, #tpu.memory_space<vmem>>, vector<8x32xf32>
      tpu.vector_store %arg11[%c0_45, %c0_46], %66 {strides = array<i32>} : memref<8x32xf32, #tpu.memory_space<vmem>>, vector<8x32xf32>,
    } else {
    }
    %c0 = arith.constant 0 : index
    %c0_1 = arith.constant 0 : index
    %3 = vector.load %arg10[%c0, %c0_1] : memref<8x32xf32, #tpu.memory_space<vmem>>, vector<8x32xf32>
    %c0_2 = arith.constant 0 : index
    %c0_3 = arith.constant 0 : index
    %4 = vector.load %arg11[%c0_2, %c0_3] : memref<8x32xf32, #tpu.memory_space<vmem>>, vector<8x32xf32>
    %c0_4 = arith.constant 0 : index
    %c0_5 = arith.constant 0 : index
    %c0_6 = arith.constant 0 : index
    %5 = vector.load %arg1[%c0_4, %c0_5, %c0_6] : memref<1x8x3xf32, #tpu.memory_space<vmem>>, vector<1x8x3xf32>
    %6 = vector.shape_cast %5 : vector<1x8x3xf32> to vector<8x3xf32>
    %c0_7 = arith.constant 0 : index
    %c0_8 = arith.constant 0 : index
    %7 = vector.load %arg4[%c0_7, %c0_8] : memref<3x128xf32, #tpu.memory_space<vmem>>, vector<3x128xf32>
    %cst = arith.constant dense<0.000000e+00> : vector<8x128xf32>
    %8 = tpu.matmul %6, %7, %cst {dimension_numbers = #tpu.dot_dimension_numbers<[1], [0], [0], [1], [0, 0, 1, 1], [], []>} : vector<8x3xf32>, vector<3x128xf32>, vector<8x128xf32> -> vector<8x128xf32>
    %c0_9 = arith.constant 0 : index
    %c0_10 = arith.constant 0 : index
    %9 = vector.load %arg5[%c0_9, %c0_10] : memref<32x128xf32, #tpu.memory_space<vmem>>, vector<32x128xf32>
    %cst_11 = arith.constant dense<0.000000e+00> : vector<8x128xf32>
    %10 = tpu.matmul %4, %9, %cst_11 {dimension_numbers = #tpu.dot_dimension_numbers<[1], [0], [0], [1], [0, 0, 1, 1], [], []>} : vector<8x32xf32>, vector<32x128xf32>, vector<8x128xf32> -> vector<8x128xf32>
    %11 = arith.addf %8, %10 : vector<8x128xf32>
    %c0_12 = arith.constant 0 : index
    %c0_13 = arith.constant 0 : index
    %12 = vector.load %arg6[%c0_12, %c0_13] : memref<32x128xf32, #tpu.memory_space<vmem>>, vector<32x128xf32>
    %cst_14 = arith.constant dense<0.000000e+00> : vector<8x128xf32>
    %13 = tpu.matmul %3, %12, %cst_14 {dimension_numbers = #tpu.dot_dimension_numbers<[1], [0], [0], [1], [0, 0, 1, 1], [], []>} : vector<8x32xf32>, vector<32x128xf32>, vector<8x128xf32> -> vector<8x128xf32>
    %14 = arith.addf %11, %13 : vector<8x128xf32>
    %c0_15 = arith.constant 0 : index
    %c0_16 = arith.constant 0 : index
    %15 = vector.load %arg8[%c0_15, %c0_16] : memref<1x128xf32, #tpu.memory_space<vmem>>, vector<1x128xf32>
    %16 = vector.broadcast %15 : vector<1x128xf32> to vector<8x128xf32>
    %17 = arith.addf %14, %16 : vector<8x128xf32>
    %18 = vector.extract_strided_slice %17 {offsets = [0, 0], sizes = [8, 32], strides = [1, 1]} : vector<8x128xf32> to vector<8x32xf32>
    %19 = arith.negf %18 : vector<8x32xf32>
    %20 = math.exp %19 : vector<8x32xf32>
    %cst_17 = arith.constant 1.000000e+00 : f32
    %21 = vector.broadcast %cst_17 : f32 to vector<8x32xf32>
    %22 = arith.addf %21, %20 : vector<8x32xf32>
    %23 = arith.divf %21, %22 : vector<8x32xf32>
    %24 = vector.extract_strided_slice %17 {offsets = [0, 32], sizes = [8, 32], strides = [1, 1]} : vector<8x128xf32> to vector<8x32xf32>
    %25 = arith.negf %24 : vector<8x32xf32>
    %26 = math.exp %25 : vector<8x32xf32>
    %cst_18 = arith.constant 1.000000e+00 : f32
    %27 = vector.broadcast %cst_18 : f32 to vector<8x32xf32>
    %28 = arith.addf %27, %26 : vector<8x32xf32>
    %29 = arith.divf %27, %28 : vector<8x32xf32>
    %30 = vector.extract_strided_slice %17 {offsets = [0, 64], sizes = [8, 32], strides = [1, 1]} : vector<8x128xf32> to vector<8x32xf32>
    %31 = math.tanh %30 : vector<8x32xf32>
    %32 = arith.mulf %29, %3 : vector<8x32xf32>
    %cst_19 = arith.constant 0.000000e+00 : f32
    %33 = vector.broadcast %cst_19 : f32 to vector<8x32xf32>
    %34 = arith.maximumf %31, %33 : vector<8x32xf32>
    %35 = arith.mulf %23, %34 : vector<8x32xf32>
    %36 = arith.addf %32, %35 : vector<8x32xf32>
    %37 = vector.extract_strided_slice %17 {offsets = [0, 96], sizes = [8, 32], strides = [1, 1]} : vector<8x128xf32> to vector<8x32xf32>
    %c0_20 = arith.constant 0 : index
    %c0_21 = arith.constant 0 : index
    %38 = vector.load %arg7[%c0_20, %c0_21] : memref<32x32xf32, #tpu.memory_space<vmem>>, vector<32x32xf32>
    %cst_22 = arith.constant dense<0.000000e+00> : vector<8x32xf32>
    %39 = tpu.matmul %36, %38, %cst_22 {dimension_numbers = #tpu.dot_dimension_numbers<[1], [0], [0], [1], [0, 0, 1, 1], [], []>} : vector<8x32xf32>, vector<32x32xf32>, vector<8x32xf32> -> vector<8x32xf32>
    %40 = arith.addf %37, %39 : vector<8x32xf32>
    %41 = arith.negf %40 : vector<8x32xf32>
    %42 = math.exp %41 : vector<8x32xf32>
    %cst_23 = arith.constant 1.000000e+00 : f32
    %43 = vector.broadcast %cst_23 : f32 to vector<8x32xf32>
    %44 = arith.addf %43, %42 : vector<8x32xf32>
    %45 = arith.divf %43, %44 : vector<8x32xf32>
    %cst_24 = arith.constant 0.000000e+00 : f32
    %46 = vector.broadcast %cst_24 : f32 to vector<8x32xf32>
    %47 = arith.maximumf %36, %46 : vector<8x32xf32>
    %48 = arith.mulf %45, %47 : vector<8x32xf32>
    %c0_25 = arith.constant 0 : index
    %c0_26 = arith.constant 0 : index
    %49 = vector.load %arg10[%c0_25, %c0_26] : memref<8x32xf32, #tpu.memory_space<vmem>>, vector<8x32xf32>
    tpu.vector_store %arg10[%c0_25, %c0_26], %36 {strides = array<i32>} : memref<8x32xf32, #tpu.memory_space<vmem>>, vector<8x32xf32>,
    %c0_27 = arith.constant 0 : index
    %c0_28 = arith.constant 0 : index
    %50 = vector.load %arg11[%c0_27, %c0_28] : memref<8x32xf32, #tpu.memory_space<vmem>>, vector<8x32xf32>
    tpu.vector_store %arg11[%c0_27, %c0_28], %48 {strides = array<i32>} : memref<8x32xf32, #tpu.memory_space<vmem>>, vector<8x32xf32>,
    %c0_29 = arith.constant 0 : index
    %c0_30 = arith.constant 0 : index
    %c0_31 = arith.constant 0 : index
    %51 = vector.load %arg9[%c0_29, %c0_30, %c0_31] : memref<1x8x128xf32, #tpu.memory_space<vmem>>, vector<1x8x32xf32>
    %52 = vector.shape_cast %51 : vector<1x8x32xf32> to vector<8x32xf32>
    %53 = vector.shape_cast %45 : vector<8x32xf32> to vector<1x8x32xf32>
    tpu.vector_store %arg9[%c0_29, %c0_30, %c0_31], %53 {strides = array<i32>} : memref<1x8x128xf32, #tpu.memory_space<vmem>>, vector<1x8x32xf32>,
    %c0_32 = arith.constant 0 : index
    %c0_33 = arith.constant 0 : index
    %c32 = arith.constant 32 : index
    %54 = vector.load %arg9[%c0_32, %c0_33, %c32] : memref<1x8x128xf32, #tpu.memory_space<vmem>>, vector<1x8x32xf32>
    %55 = vector.shape_cast %54 : vector<1x8x32xf32> to vector<8x32xf32>
    %56 = vector.shape_cast %36 : vector<8x32xf32> to vector<1x8x32xf32>
    tpu.vector_store %arg9[%c0_32, %c0_33, %c32], %56 {strides = array<i32>} : memref<1x8x128xf32, #tpu.memory_space<vmem>>, vector<1x8x32xf32>,
    %c0_34 = arith.constant 0 : index
    %c0_35 = arith.constant 0 : index
    %c64 = arith.constant 64 : index
    %57 = vector.load %arg9[%c0_34, %c0_35, %c64] : memref<1x8x128xf32, #tpu.memory_space<vmem>>, vector<1x8x32xf32>
    %58 = vector.shape_cast %57 : vector<1x8x32xf32> to vector<8x32xf32>
    %59 = vector.shape_cast %48 : vector<8x32xf32> to vector<1x8x32xf32>
    tpu.vector_store %arg9[%c0_34, %c0_35, %c64], %59 {strides = array<i32>} : memref<1x8x128xf32, #tpu.memory_space<vmem>>, vector<1x8x32xf32>,
    %cst_36 = arith.constant 0.000000e+00 : f32
    %60 = vector.broadcast %cst_36 : f32 to vector<8x32xf32>
    %c0_37 = arith.constant 0 : index
    %c0_38 = arith.constant 0 : index
    %c96 = arith.constant 96 : index
    %61 = vector.load %arg9[%c0_37, %c0_38, %c96] : memref<1x8x128xf32, #tpu.memory_space<vmem>>, vector<1x8x32xf32>
    %62 = vector.shape_cast %61 : vector<1x8x32xf32> to vector<8x32xf32>
    %63 = vector.shape_cast %60 : vector<8x32xf32> to vector<1x8x32xf32>
    tpu.vector_store %arg9[%c0_37, %c0_38, %c96], %63 {strides = array<i32>} : memref<1x8x128xf32, #tpu.memory_space<vmem>>, vector<1x8x32xf32>,
    return
  }
  func.func @transform_0(%arg0: i32) -> (i32, i32, i32) {
    %c0_i32 = arith.constant 0 : i32
    %c0_i32_0 = arith.constant 0 : i32
    %c0_i32_1 = arith.constant 0 : i32
    return %arg0, %c0_i32, %c0_i32_0 : i32, i32, i32
  }
  func.func @transform_1(%arg0: i32) -> (i32, i32) {
    %c0_i32 = arith.constant 0 : i32
    %c0_i32_0 = arith.constant 0 : i32
    %c0_i32_1 = arith.constant 0 : i32
    return %c0_i32, %c0_i32_0 : i32, i32
  }
  func.func @transform_2(%arg0: i32) -> (i32, i32) {
    %c0_i32 = arith.constant 0 : i32
    %c0_i32_0 = arith.constant 0 : i32
    %c0_i32_1 = arith.constant 0 : i32
    return %c0_i32, %c0_i32_0 : i32, i32
  }
  func.func @transform_3(%arg0: i32) -> (i32, i32) {
    %c0_i32 = arith.constant 0 : i32
    %c0_i32_0 = arith.constant 0 : i32
    %c0_i32_1 = arith.constant 0 : i32
    return %c0_i32, %c0_i32_0 : i32, i32
  }
  func.func @transform_4(%arg0: i32) -> (i32, i32) {
    %c0_i32 = arith.constant 0 : i32
    %c0_i32_0 = arith.constant 0 : i32
    %c0_i32_1 = arith.constant 0 : i32
    return %c0_i32, %c0_i32_0 : i32, i32
  }
  func.func @transform_5(%arg0: i32) -> (i32, i32) {
    %c0_i32 = arith.constant 0 : i32
    %c0_i32_0 = arith.constant 0 : i32
    %c0_i32_1 = arith.constant 0 : i32
    return %c0_i32, %c0_i32_0 : i32, i32
  }
  func.func @transform_6(%arg0: i32) -> (i32, i32) {
    %c0_i32 = arith.constant 0 : i32
    %c0_i32_0 = arith.constant 0 : i32
    %c0_i32_1 = arith.constant 0 : i32
    return %c0_i32, %c0_i32_0 : i32, i32
  }
  func.func @transform_7(%arg0: i32) -> (i32, i32) {
    %c0_i32 = arith.constant 0 : i32
    %c0_i32_0 = arith.constant 0 : i32
    %c0_i32_1 = arith.constant 0 : i32
    return %c0_i32, %c0_i32_0 : i32, i32
  }
  func.func @transform_8(%arg0: i32) -> (i32, i32, i32) {
    %c0_i32 = arith.constant 0 : i32
    %c0_i32_0 = arith.constant 0 : i32
    %c0_i32_1 = arith.constant 0 : i32
    return %arg0, %c0_i32, %c0_i32_0 : i32, i32, i32
  }
}

</mosaic_0001>

<bundles_post_ra>
// kernel: lstmc_sequence.1
= control target key start
LH: loop header
LB: loop body
LE: loop exit
PB: predicated region body
PF: predicated region fallthrough
CT: control target
= control target key end

     0   :  { %s922_s27 = smov 0   ;;  %s1019_s0 = inlined_call_operand.vmem [shape: f32[16,8,3], index: 0, kind: input, shape index: {}]   ;;  %s1020_s1 = inlined_call_operand.vmem [shape: f32[8,32], index: 1, kind: input, shape index: {}]   ;;  %s1021_s2 = inlined_call_operand.vmem [shape: f32[8,32], index: 2, kind: input, shape index: {}]   ;;  %s1022_s3 = inlined_call_operand.vmem [shape: f32[3,128], index: 3, kind: input, shape index: {}]   ;;  %s1023_s4 = inlined_call_operand.vmem [shape: f32[32,128], index: 4, kind: input, shape index: {}]   ;;  %s1024_s5 = inlined_call_operand.vmem [shape: f32[32,128], index: 5, kind: input, shape index: {}]   ;;  %s1025_s6 = inlined_call_operand.vmem [shape: f32[32,32], index: 6, kind: input, shape index: {}]   ;;  %s1026_s7 = inlined_call_operand.vmem [shape: f32[1,128], index: 7, kind: input, shape index: {}]   ;;  %s1027_s8 = inlined_call_operand.vmem [shape: f32[16,8,128], index: 8, kind: output, shape index: {}]  }
   0x1 LB: > { %s748_s28 = sadd.s32 4294967295, %s869_s27   ;;  %p752_p0 = scmp.ge.s32.totalorder %s869_s27, 1  ;;  %s869_s27 = sphi %s922_s27, %s18_s27  }
   0x2   : > { %p261_p1 = scmp.lt.s32.totalorder %s869_s27, 17 }
   0x4   : > { %p262_p2 = pnand %p752_p0, %p261_p1 }
   0x5   : > { %p293_p3 = scmp.lt.s32.totalorder (!%p262_p2), %s748_s28, 15  ;;  %p755_p4 = scmp.ne.s32.totalorder (!%p262_p2), %s748_s28, 0 }
   0x6   : > { %265 = sbr.rel (%p262_p2) target bundleno = 1087 (0x43f), region = 52 }
   0xd   : > { %s294_s29 = scalar_select %p293_p3, %s748_s28, 15 }
   0xe   : > { %304 = sbr.rel (%p755_p4) target bundleno = 21 (0x15), region = 56  ;;  %v305_v0 = vld [vmem:[%s1020_s1] sm:$0xff] (!%p755_p4)  ;;  %vm306_vm0 = vcmask (!%p755_p4), 261120  }
   0xf   : > { %s753_s30 = sshll.u32 %s294_s29, 3  ;;  %v308_v1 = vld [vmem:[%s1021_s2] sm:$0xff] (!%p755_p4)  ;;  %307 = vst.msk [vmem:[#allocation2] sm:$0xff] (!%p755_p4), %vm306_vm0, %v305_v0 }
  0x10   : > { %s296_s11 = scalar_lea.vmem %s1019_s0, %s753_s30  ;;  %s936_s14 = scalar_lea.vmem %s1027_s8, %s753_s30  ;;  %309 = vst.msk [vmem:[#allocation3] sm:$0xff] (!%p755_p4), %vm306_vm0, %v308_v1 }
  0x15 PF: > { %v313_v2 = vld [vmem:[%s1022_s3] sm:$0x7]  ;;  %vm396_vm1 = vcmask 1042432   ;;  %v871_v4 = vmov 0.0   ;;  %v872_v5 = vmov 0.0|0.0   ;;  %v315_v6 = vld [vmem:[%s1023_s4 + $0x8] sm:$0xff] }
  0x16   : > { %v314_v3 = vld [vmem:[%s1023_s4] sm:$0xff]  ;;  %794 = vmatprep.subr.mxu1 %v871_v4  ;;  %821 = vmatprep.subr.bf16.mxu0 %v872_v5  ;;  %vm392_vm2 = vcmask 23552   ;;  %vm873_vm3 = vmmov 0   ;;  %v471_v10 = vld [vmem:[%s1024_s5 + $0x8] sm:$0xff]  ;;  %v316_v11 = vld [vmem:[%s1023_s4 + $0x10] sm:$0xff]  ;;  %vm318_vm4 = vcmask 261120  }
  0x17   : > { %v312_v7 = vld [vmem:[%s296_s11] sm:$0xff]  ;;  %795 = vmatpush3.msk.msra.mxu1 %vm396_vm1, %v313_v2  ;;  %v822_v9 = vpack.c.bf16 %v315_v6, %v314_v3  ;;  %796 = vmatprep.mubr.msk.f32.mxu1 %vm873_vm3, %v871_v4  ;;  %v317_v12 = vld [vmem:[%s1023_s4 + $0x18] sm:$0xff]  ;;  %v472_v14 = vld [vmem:[%s1024_s5 + $0x10] sm:$0xff]  ;;  %s874_s19 = smov 64   ;;  %s875_s20 = smov 32   ;;  %vm686_vm5 = vcmask 523520  }
  0x18   : > { %v470_v8 = vld [vmem:[%s1024_s5] sm:$0xff]  ;;  %827 = vmatprep.subr.bf16.mxu1 %v872_v5  ;;  %797 = vmatmul.mubr.msk.f32.vlgmr.msra.gmra.mrb[0].mxu1 %vm392_vm2, %v312_v7  ;;  %v473_v15 = vld [vmem:[%s1024_s5 + $0x18] sm:$0xff]  ;;  %v825_v16 = vpack.c.bf16 %v317_v12, %v316_v11  ;;  %v311_v18 = vld [vmem:[#allocation3] sm:$0xff]  ;;  %s876_s30 = smov 96   ;;  %vm691_vm6 = vcmask 785920   ;;  %vm693_vm7 = vcmask 1048320  }
  0x19   : > { %v828_v13 = vpack.c.bf16 %v471_v10, %v470_v8  ;;  %823 = vmatpush3.bf16.msra.mxu0 %v822_v9  ;;  %791 = vmatprep.mubr.msk.f32.mxu0 %vm873_vm3, %v871_v4  ;;  %v831_v17 = vpack.c.bf16 %v473_v15, %v472_v14  ;;  %v310_v19 = vld [vmem:[#allocation2] sm:$0xff]  ;;  %v579_v36 = vld [vmem:[%s1025_s6 + $0x8] sm:$0xff]  ;;  %v580_v37 = vld [vmem:[%s1025_s6 + $0x10] sm:$0xff] }
  0x1a   : > { %824 = vmatprep.subr.bf16.mxu0 %v872_v5  ;;  %807 = vmatprep.mubr.msk.f32.mxu1 %vm873_vm3, %v871_v4  ;;  %v760_v26 = vld [vmem:[%s1026_s7] ss:$0 sm:$0xff]  ;;  %v581_v39 = vld [vmem:[%s1025_s6 + $0x18] sm:$0xff] }
  0x1b   : > { %829 = vmatpush3.bf16.msra.mxu1 %v828_v13  ;;  %v578_v35 = vld [vmem:[%s1025_s6] sm:$0xff]  ;;  %v837_v40 = vpack.c.bf16 %v581_v39, %v580_v37 }
  0x1c   : > { %830 = vmatprep.subr.bf16.mxu1 %v872_v5  ;;  %v834_v38 = vpack.c.bf16 %v579_v36, %v578_v35 }
  0x1d   : > { %826 = vmatpush3.bf16.msra.mxu0 %v825_v16 }
  0x1e   : > { %833 = vmatprep.subr.bf16.mxu0 %v872_v5 }
  0x1f   : > { %832 = vmatpush3.bf16.msra.mxu1 %v831_v17 }
  0x20   : > { %792 = vmatmul.mubr.msk.f32.vlgmr.msra.gmra.mrb[0].mxu0 %vm318_vm4, %v311_v18 }
  0x21   : > { %818 = vmatprep.mubr.msk.f32.mxu0 %vm873_vm3, %v871_v4  ;;  %835 = vmatpush3.bf16.msra.mxu0 %v834_v38 }
  0x22   : > { %808 = vmatmul.mubr.msk.f32.vlgmr.msra.gmra.mrb[2].mxu1 %vm318_vm4, %v310_v19  ;;  %836 = vmatprep.subr.bf16.mxu0 %v872_v5 }
  0x25   : > { %838 = vmatpush3.bf16.msra.mxu0 %v837_v40 }
  0xeb   : > { %v466_v20 = vpop.f32.mrb[0].mxu1 }
  0xec   : > { %v798_v21 = vpop.f32.mrb[1].mxu1 }
  0xf3   : > { %v388_v22 = vpop.f32.mrb[0].mxu0 }
  0xf4   : > { %v467_v23 = vadd.f32 %v466_v20, %v388_v22  ;;  %v793_v24 = vpop.f32.mrb[1].mxu0 }
  0xf5   : > { %v543_v25 = vpop.f32.mrb[2].mxu1 }
  0xf6   : > { %v809_v27 = vpop.f32.mrb[3].mxu1  ;;  %v547_v28 = vadd.f32 %v543_v25, %v467_v23 }
  0xf8   : > { %v555_v29 = vadd.f32 %v760_v26, %v547_v28 }
  0xfa   : > { %853 = vtanh.f32 %v555_v29  ;;  %v761_v32 = vmul.f32 -1.442695, %v555_v29 }
  0xfc   : > { %855 = vpow2.f32 %v761_v32 }
 0x104   : > { %v854_v30 = vpop.eup %853 }
 0x105   : > { %v567_v31 = vmax.f32 %v854_v30, 0.0 }
 0x106   : > { %v856_v33 = vpop.eup %855 }
 0x107   : > { %569 = vrot.lane.b32.xlu0 %v567_v31, %s874_s19  ;;  %v559_v34 = vadd.f32 1.0, %v856_v33 }
 0x109   : > { %857 = vrcp.f32 %v559_v34 }
 0x10b   : > { %563 = vrot.lane.b32.xlu0 %v310_v19, %s875_s20 }
 0x113   : > { %v858_v41 = vpop.eup %857 }
 0x179   : > { %v570_v42 = vpop.permute.xlu0 %569 }
 0x17a   : > { %v572_v43 = vmul.f32 %v858_v41, %v570_v42 }
 0x17c   : > { %574 = vrot.lane.b32.xlu1 %v572_v43, %s875_s20 }
 0x17d   : > { %v564_v44 = vpop.permute.xlu0 %563 }
 0x17e   : > { %v566_v45 = vmul.f32 %v858_v41, %v564_v44 }
 0x1ee   : > { %v575_v46 = vpop.permute.xlu1 %574 }
 0x1ef   : > { %v577_v47 = vadd.f32 %v575_v46, %v566_v45 }
 0x1f1   : > { %583 = vrot.lane.b32.xlu1 %v577_v47, %s876_s30  ;;  %v668_v48 = vmax.f32 %v577_v47, 0.0 }
 0x1f5   : > { %670 = vrot.lane.b32.xlu1 %v668_v48, %s874_s19 }
 0x263   : > { %v584_v49 = vpop.permute.xlu1 %583 }
 0x264   : > { %675 = vst.msk [vmem:[#allocation2] sm:$0xff] %vm318_vm4, %v584_v49  ;;  %819 = vmatmul.mubr.msk.f32.vlgmr.msra.gmra.mrb[2].mxu0 %vm318_vm4, %v584_v49 }
 0x267   : > { %v671_v58 = vpop.permute.xlu1 %670 }
 0x337   : > { %v653_v50 = vpop.f32.mrb[2].mxu0 }
 0x338   : > { %658 = vrot.lane.b32.xlu0 %v653_v50, %s876_s30  ;;  %v820_v51 = vpop.f32.mrb[3].mxu0 }
 0x3aa   : > { %v659_v52 = vpop.permute.xlu0 %658 }
 0x3ab   : > { %v661_v53 = vadd.f32 %v659_v52, %v555_v29 }
 0x3ad   : > { %v763_v54 = vmul.f32 -1.442695, %v661_v53 }
 0x3af   : > { %859 = vpow2.f32 %v763_v54 }
 0x3b9   : > { %v860_v55 = vpop.eup %859 }
 0x3ba   : > { %v665_v56 = vadd.f32 1.0, %v860_v55 }
 0x3bc   : > { %861 = vrcp.f32 %v665_v56 }
 0x3c6   : > { %v862_v57 = vpop.eup %861 }
 0x3c7   : > { %682 = vrot.lane.b32.xlu0 %v862_v57, %s875_s20  ;;  %v673_v59 = vmul.f32 %v862_v57, %v671_v58 }
 0x3c9   : > { %688 = vrot.lane.b32.xlu1 %v673_v59, %s876_s30 }
 0x3cb   : > { %677 = vrot.lane.b32.xlu0 %v673_v59, %s875_s20 }
 0x439   : > { %v683_v60 = vpop.permute.xlu0 %682 }
 0x43a   : > { %685 = vst.msk [vmem:[%s936_s14] sm:$0xff] %vm318_vm4, %v683_v60 }
 0x43b   : > { %687 = vst.msk [vmem:[%s936_s14] sm:$0xff] %vm686_vm5, %v577_v47  ;;  %v689_v61 = vpop.permute.xlu1 %688 }
 0x43c   : > { %692 = vst.msk [vmem:[%s936_s14] sm:$0xff] %vm691_vm6, %v689_v61 }
 0x43d   : > { %694 = vst.msk [vmem:[%s936_s14] sm:$0xff] %vm693_vm7, %v871_v4  ;;  %v678_v62 = vpop.permute.xlu0 %677 }
 0x43e   : > { %680 = vst.msk [vmem:[#allocation3] sm:$0xff] %vm318_vm4, %v678_v62 }
 0x43f PF: > { %s18_s27 = sadd.s32 1, %s869_s27  }
 0x440   : > { %p15_p5 = scmp.ge.s32.totalorder %s18_s27, 18  }
 0x442   :  { %17 = sbr.rel (!%p15_p5) target bundleno = 1 (0x1), region = 86 }

</bundles_post_ra>
